<compile_context>
chip_gen: v7x
topology: tpu7x:2x2x1
jax: 0.10.0
libtpu: 0.0.40
codegen_flags: <defaults>
</compile_context>

<pallas_src>
import functools
import math

import numpy as np
import jax
import jax.numpy as jnp
from jax.experimental import pallas as pl
from jax.experimental.pallas import tpu as pltpu


def _round_up(n, m):
    return ((n + m - 1) // m) * m


def _pad_axis(a, axis, target):
    pad = target - a.shape[axis]
    if pad <= 0:
        return a
    widths = [(0, 0)] * a.ndim
    widths[axis] = (0, pad)
    return jnp.pad(a, widths)


def _cdil_block_kernel(x_ref, w1_ref, b1_ref, w2_ref, b2_ref, o_ref, *,
                       offs, L, hdim_p, fuse_res):
    """One grid step: (c_in_p, bblk*L) -> (c_out_p, bblk*L); one wide matmul per layer."""
    W = x_ref.shape[-1]                                   # bblk * L (multiple of 128)
    x = x_ref[...]                                        # (c_in_p, W) f32

    # Within-element lane position, hoisted once and shared by both tap stacks.
    lane = jax.lax.broadcasted_iota(jnp.int32, (1, W), 1)
    if (L & (L - 1)) == 0:
        pos = jax.lax.bitwise_and(lane, L - 1)
    else:
        pos = jax.lax.rem(lane, L)
    # Per-tap "no wrap" masks (offs already reduced mod L, so 0 <= off < L).
    base_mask = {off: pos < (L - off) for off in offs if off != 0}

    def stack_taps(a):
        # Tap `off` reads a[:, e*L + ((t mod L) + off) mod L] for lane t of element e:
        # roll by -off for the in-range lanes, roll by (L - off) for the wrapped lanes,
        # selected by the within-element mask (keeps the wrap inside each element).
        parts = []
        for off in offs:
            if off == 0:
                parts.append(a)
                continue
            base = pltpu.roll(a, (-off) % W, 1)           # a[:, t + off]       (no wrap)
            wrap = pltpu.roll(a, (L - off) % W, 1)        # a[:, t + off - L]   (wrapped)
            parts.append(jnp.where(base_mask[off], base, wrap))
        return parts[0] if len(parts) == 1 else jnp.concatenate(parts, axis=0)

    # Layer 1: conv1 taps (+ fused residual 1x1 rows) in one MXU matmul, BN1 folded.
    h1 = jnp.dot(w1_ref[...], stack_taps(x),
                 preferred_element_type=jnp.float32) + b1_ref[...]
    if fuse_res:
        h = jnp.maximum(h1[:hdim_p, :], 0.0)              # conv1 -> BN1 -> ReLU
        res = h1[hdim_p:, :]                              # residual 1x1 conv (+ bias)
    else:
        h = jnp.maximum(h1, 0.0)
        res = x                                           # identity residual (c_in == c_out)

    # Layer 2: conv2 taps in one MXU matmul, BN2 folded -> bias -> ReLU.
    out = jnp.maximum(
        jnp.dot(w2_ref[...], stack_taps(h),
                preferred_element_type=jnp.float32) + b2_ref[...], 0.0)
    o_ref[...] = out + res                                # outer ReLU redundant: out >= 0


def cdil_block(x, w1, w2, s1, b1, s2, b2, wr=None, br=None, *, ks, dil,
               bblk=None, vmem_budget_bytes=8 << 20):
    """CDILBlock forward (eval mode).

    x : (B, c_in, L) f32
    w1: (hdim, c_in, ks)   conv1 weight, PyTorch layout
    w2: (c_out, hdim, ks)  conv2 weight, PyTorch layout
    s1,b1 / s2,b2: folded eval-mode BatchNorm per-channel scale / bias
    wr: (c_out, c_in) residual 1x1 conv weight (None -> identity, needs c_in == c_out)
    br: (c_out,) residual bias (None -> zeros)
    """
    B, c_in, L = x.shape
    hdim = w1.shape[0]
    c_out = w2.shape[0]
    # PyTorch 'same' padding split: left = total // 2 (matches torch _ConvNd for any ks).
    left_pad = (dil * (ks - 1)) // 2

    c_in_p = _round_up(c_in, 8)
    hdim_p = _round_up(hdim, 8)
    c_out_p = _round_up(c_out, 8)

    # Tap offsets reduced mod L (circular conv).  If the residual 1x1 conv is fused and
    # no zero-offset tap exists (even ks), append an extra zero-offset tap column.
    offs = [((j * dil - left_pad) % L) for j in range(ks)]
    fuse_res = wr is not None
    if fuse_res and 0 not in offs:
        offs = offs + [0]
    n_taps = len(offs)

    # ---- host-side prep: fold BN scale into conv rows, stack taps along columns.
    def stack_w(w, cip):
        co, ci, kw = w.shape
        st = jnp.zeros((co, n_taps, cip), w.dtype)
        st = st.at[:, :kw, :ci].set(jnp.transpose(w, (0, 2, 1)))
        return st.reshape(co, n_taps * cip)

    w1f = w1 * s1[:, None, None]                  # BN1 scale folded into conv1 output rows
    w2f = w2 * s2[:, None, None]                  # BN2 scale folded into conv2 output rows
    w1s = _pad_axis(stack_w(w1f, c_in_p), 0, hdim_p)       # (hdim_p, n_taps*c_in_p)
    w2s = _pad_axis(stack_w(w2f, hdim_p), 0, c_out_p)      # (c_out_p, n_taps*hdim_p)
    b1p = _pad_axis(b1.reshape(hdim, 1), 0, hdim_p)
    b2p = _pad_axis(b2.reshape(c_out, 1), 0, c_out_p)

    if fuse_res:
        # Append residual 1x1 rows to conv1's stacked weight in the zero-offset tap block.
        zidx = offs.index(0)
        wr_rows = jnp.zeros((c_out, n_taps, c_in_p), x.dtype)
        wr_rows = wr_rows.at[:, zidx, :c_in].set(wr)
        wr_rows = wr_rows.reshape(c_out, n_taps * c_in_p)
        w1_aug = jnp.concatenate([w1s, _pad_axis(wr_rows, 0, c_out_p)], axis=0)
        if br is None:
            br = jnp.zeros((c_out,), x.dtype)
        b1_aug = jnp.concatenate(
            [b1p, _pad_axis(br.reshape(c_out, 1), 0, c_out_p)], axis=0)
    else:
        assert c_in == c_out, "identity residual requires c_in == c_out"
        w1_aug, b1_aug = w1s, b1p
    m1 = w1_aug.shape[0]

    # ---- choose the batch block from a VMEM budget; keep the grid >= 2 steps so the
    # v7x megacore / pipeline stay busy, and keep the wide lane dim 128-aligned.
    per_lane_f32 = (2 * c_in_p + 2 * c_out_p            # double-buffered in/out blocks
                    + n_taps * c_in_p + m1 + hdim_p     # taps1, h1, h
                    + n_taps * hdim_p + 2 * c_out_p)    # taps2, out, res
    bytes_per_lane = 4 * per_lane_f32
    lane_fac = 128 // math.gcd(L, 128)
    if bblk is None:
        bblk = max(1, min(B, vmem_budget_bytes // (bytes_per_lane * L)))
    if B >= 2:
        bblk = min(bblk, (B + 1) // 2)                   # at least 2 grid steps
    bblk = max(lane_fac, (bblk // lane_fac) * lane_fac)  # (bblk*L) % 128 == 0
    Bp = _round_up(B, bblk)
    W = bblk * L

    # ---- lay x out as one lane-dense slab (c_in_p, Bp*L).
    xt = _pad_axis(_pad_axis(jnp.transpose(x, (1, 0, 2)), 0, c_in_p), 1, Bp)
    x_wide = xt.reshape(c_in_p, Bp * L)

    est_block_bytes = bytes_per_lane * W
    vmem_limit = int(min(max(4 * est_block_bytes, 32 << 20), 64 << 20))

    kernel = functools.partial(_cdil_block_kernel, offs=tuple(offs), L=L,
                               hdim_p=hdim_p, fuse_res=fuse_res)

    y_wide = pl.pallas_call(
        kernel,
        out_shape=jax.ShapeDtypeStruct((c_out_p, Bp * L), jnp.float32),
        grid=(Bp // bblk,),
        in_specs=[
            pl.BlockSpec((c_in_p, W), lambda g: (0, g)),                 # x slab block
            pl.BlockSpec((m1, n_taps * c_in_p), lambda g: (0, 0)),       # conv1+res, taps stacked
            pl.BlockSpec((m1, 1), lambda g: (0, 0)),                     # bn1 bias (+res bias)
            pl.BlockSpec((c_out_p, n_taps * hdim_p), lambda g: (0, 0)),  # conv2, taps stacked
            pl.BlockSpec((c_out_p, 1), lambda g: (0, 0)),                # bn2 bias
        ],
        out_specs=pl.BlockSpec((c_out_p, W), lambda g: (0, g)),
        compiler_params=pltpu.CompilerParams(
            dimension_semantics=("parallel",),
            vmem_limit_bytes=vmem_limit),
    )(x_wide, w1_aug, b1_aug, w2s, b2p)

    # back to (B, c_out, L)
    return jnp.transpose(y_wide.reshape(c_out_p, Bp, L)[:c_out, :B], (1, 0, 2))


def _reference(x, w1_pt, w2_pt, s1, b1, s2, b2, wr, br, *, ks, dil):
    """Pure-JAX reference mirroring PyTorch semantics (w*_pt in (out, in, ks) layout)."""
    L = x.shape[-1]
    left_pad = (dil * (ks - 1)) // 2

    def circ_conv(inp, w):
        acc = 0.0
        for j in range(ks):
            off = j * dil - left_pad
            idx = (jnp.arange(L) + off) % L
            acc = acc + jnp.einsum('oc,bcl->bol', w[:, :, j], inp[..., idx],
                                   precision=jax.lax.Precision.HIGHEST)
        return acc

    h = jnp.maximum(circ_conv(x, w1_pt) * s1[None, :, None] + b1[None, :, None], 0.0)
    out = jnp.maximum(circ_conv(h, w2_pt) * s2[None, :, None] + b2[None, :, None], 0.0)
    res = jnp.einsum('oc,bcl->bol', wr, x,
                     precision=jax.lax.Precision.HIGHEST) + br[None, :, None]
    return jnp.maximum(out, 0.0) + res


if __name__ == "__main__":
    EPS = 1e-5

    # --- Test 1: CDILBlock(c_in=4, c_out=8, hdim=16, ks=3, dil=2) -> 1x1 residual conv.
    B, C_IN, C_OUT, HDIM, L, KS, DIL = 4, 4, 8, 16, 128, 3, 2
    key = jax.random.PRNGKey(0)
    ks_keys = jax.random.split(key, 12)

    x = jax.random.normal(ks_keys[0], (B, C_IN, L), jnp.float32)
    w1_pt = jax.random.normal(ks_keys[1], (HDIM, C_IN, KS), jnp.float32) / math.sqrt(C_IN * KS)
    w2_pt = jax.random.normal(ks_keys[2], (C_OUT, HDIM, KS), jnp.float32) / math.sqrt(HDIM * KS)
    wr_pt = jax.random.normal(ks_keys[3], (C_OUT, C_IN, 1), jnp.float32) / math.sqrt(C_IN)
    br = jax.random.normal(ks_keys[4], (C_OUT,), jnp.float32) * 0.1

    g1 = 1.0 + 0.1 * jax.random.normal(ks_keys[5], (HDIM,), jnp.float32)
    beta1 = 0.1 * jax.random.normal(ks_keys[6], (HDIM,), jnp.float32)
    rm1 = 0.1 * jax.random.normal(ks_keys[7], (HDIM,), jnp.float32)
    rv1 = 1.0 + 0.1 * jax.random.uniform(ks_keys[8], (HDIM,), jnp.float32)
    g2 = 1.0 + 0.1 * jax.random.normal(ks_keys[9], (C_OUT,), jnp.float32)
    beta2 = 0.1 * jax.random.normal(ks_keys[10], (C_OUT,), jnp.float32)
    rm2 = 0.1 * jax.random.normal(ks_keys[11], (C_OUT,), jnp.float32)
    rv2 = jnp.ones((C_OUT,), jnp.float32) * 1.05

    s1 = g1 / jnp.sqrt(rv1 + EPS)
    b1 = beta1 - rm1 * s1
    s2 = g2 / jnp.sqrt(rv2 + EPS)
    b2 = beta2 - rm2 * s2
    wr = wr_pt[:, :, 0]

    y = cdil_block(x, w1_pt, w2_pt, s1, b1, s2, b2, wr, br, ks=KS, dil=DIL)
    jax.block_until_ready(y)
    y_ref = _reference(x, w1_pt, w2_pt, s1, b1, s2, b2, wr, br, ks=KS, dil=DIL)
    np.testing.assert_allclose(np.asarray(y), np.asarray(y_ref), rtol=2e-3, atol=2e-3)
    assert y.shape == (B, C_OUT, L) and y.dtype == jnp.float32

    # --- Test 2: c_in == c_out -> identity residual path (res module is None).
    B2, C2, HDIM2, KS2, DIL2 = 2, 8, 16, 3, 1
    k2 = jax.random.split(jax.random.PRNGKey(0), 6)
    x2 = jax.random.normal(k2[0], (B2, C2, L), jnp.float32)
    w1b = jax.random.normal(k2[1], (HDIM2, C2, KS2), jnp.float32) / math.sqrt(C2 * KS2)
    w2b = jax.random.normal(k2[2], (C2, HDIM2, KS2), jnp.float32) / math.sqrt(HDIM2 * KS2)
    s1b = 1.0 + 0.05 * jax.random.normal(k2[3], (HDIM2,), jnp.float32)
    b1b = 0.05 * jax.random.normal(k2[4], (HDIM2,), jnp.float32)
    s2b = jnp.ones((C2,), jnp.float32)
    b2b = 0.05 * jax.random.normal(k2[5], (C2,), jnp.float32)

    y2 = cdil_block(x2, w1b, w2b, s1b, b1b, s2b, b2b, None, None, ks=KS2, dil=DIL2)
    jax.block_until_ready(y2)
    y2_ref = _reference(x2, w1b, w2b, s1b, b1b, s2b, b2b,
                        jnp.eye(C2, dtype=jnp.float32), jnp.zeros((C2,), jnp.float32),
                        ks=KS2, dil=DIL2)
    np.testing.assert_allclose(np.asarray(y2), np.asarray(y2_ref), rtol=2e-3, atol=2e-3)

    print("KERNEL_OK")
</pallas_src>

<mosaic_0001>
module attributes {stable_mosaic.version = 11 : i64} {
  func.func @_cdil_block_kernel(%arg0: i32, %arg1: memref<8x256xf32, #tpu.memory_space<vmem>>, %arg2: memref<24x24xf32, #tpu.memory_space<vmem>>, %arg3: memref<24x1xf32, #tpu.memory_space<vmem>>, %arg4: memref<8x48xf32, #tpu.memory_space<vmem>>, %arg5: memref<8x1xf32, #tpu.memory_space<vmem>>, %arg6: memref<8x256xf32, #tpu.memory_space<vmem>>) attributes {dimension_semantics = [#tpu.dimension_semantics<parallel>], iteration_bounds = array<i64: 2>, scalar_prefetch = 0 : i64, scratch_operands = 0 : i64, tpu.core_type = #tpu.core_type<tc>, window_params = [{transform_indices = @transform_0, window_bounds = array<i64: 8, 256>}, {pipeline_mode = #tpu.pipeline_mode<synchronous>, transform_indices = @transform_1, window_bounds = array<i64: 24, 24>}, {pipeline_mode = #tpu.pipeline_mode<synchronous>, transform_indices = @transform_2, window_bounds = array<i64: 24, 1>}, {pipeline_mode = #tpu.pipeline_mode<synchronous>, transform_indices = @transform_3, window_bounds = array<i64: 8, 48>}, {pipeline_mode = #tpu.pipeline_mode<synchronous>, transform_indices = @transform_4, window_bounds = array<i64: 8, 1>}, {transform_indices = @transform_5, window_bounds = array<i64: 8, 256>}]} {
    %c0 = arith.constant 0 : index
    %c0_0 = arith.constant 0 : index
    %0 = vector.load %arg1[%c0, %c0_0] : memref<8x256xf32, #tpu.memory_space<vmem>>, vector<8x256xf32>
    %1 = tpu.iota {dimensions = array<i32: 1>} : vector<1x256xi32>
    %c127_i32 = arith.constant 127 : i32
    %2 = vector.broadcast %c127_i32 : i32 to vector<1x256xi32>
    %3 = arith.andi %1, %2 : vector<1x256xi32>
    %c2_i32 = arith.constant 2 : i32
    %4 = vector.broadcast %c2_i32 : i32 to vector<1x256xi32>
    %5 = arith.cmpi slt, %3, %4 : vector<1x256xi32>
    %c126_i32 = arith.constant 126 : i32
    %6 = vector.broadcast %c126_i32 : i32 to vector<1x256xi32>
    %7 = arith.cmpi slt, %3, %6 : vector<1x256xi32>
    %c0_1 = arith.constant 0 : index
    %c0_2 = arith.constant 0 : index
    %8 = vector.load %arg2[%c0_1, %c0_2] : memref<24x24xf32, #tpu.memory_space<vmem>>, vector<24x24xf32>
    %c130_i32 = arith.constant 130 : i32
    %9 = tpu.dynamic_rotate %0 by %c130_i32 dim 1 : vector<8x256xf32>, i32 -> vector<8x256xf32>
    %c2_i32_3 = arith.constant 2 : i32
    %10 = tpu.dynamic_rotate %0 by %c2_i32_3 dim 1 : vector<8x256xf32>, i32 -> vector<8x256xf32>
    %11 = vector.shape_cast %5 : vector<1x256xi1> to vector<1x256xi1>
    %12 = vector.broadcast %11 : vector<1x256xi1> to vector<8x256xi1>
    %13 = arith.select %12, %9, %10 : vector<8x256xi1>, vector<8x256xf32>
    %c254_i32 = arith.constant 254 : i32
    %14 = tpu.dynamic_rotate %0 by %c254_i32 dim 1 : vector<8x256xf32>, i32 -> vector<8x256xf32>
    %c126_i32_4 = arith.constant 126 : i32
    %15 = tpu.dynamic_rotate %0 by %c126_i32_4 dim 1 : vector<8x256xf32>, i32 -> vector<8x256xf32>
    %16 = vector.shape_cast %7 : vector<1x256xi1> to vector<1x256xi1>
    %17 = vector.broadcast %16 : vector<1x256xi1> to vector<8x256xi1>
    %18 = arith.select %17, %14, %15 : vector<8x256xi1>, vector<8x256xf32>
    %19 = tpu.concatenate %13, %0, %18 in 0 : vector<8x256xf32>, vector<8x256xf32>, vector<8x256xf32> -> vector<24x256xf32>
    %cst = arith.constant dense<0.000000e+00> : vector<24x256xf32>
    %20 = tpu.matmul %8, %19, %cst {dimension_numbers = #tpu.dot_dimension_numbers<[1], [0], [0], [1], [0, 0, 1, 1], [], []>} : vector<24x24xf32>, vector<24x256xf32>, vector<24x256xf32> -> vector<24x256xf32>
    %c0_5 = arith.constant 0 : index
    %c0_6 = arith.constant 0 : index
    %21 = vector.load %arg3[%c0_5, %c0_6] : memref<24x1xf32, #tpu.memory_space<vmem>>, vector<24x1xf32>
    %22 = vector.broadcast %21 : vector<24x1xf32> to vector<24x256xf32>
    %23 = arith.addf %20, %22 : vector<24x256xf32>
    %24 = vector.extract_strided_slice %23 {offsets = [0, 0], sizes = [16, 256], strides = [1, 1]} : vector<24x256xf32> to vector<16x256xf32>
    %cst_7 = arith.constant 0.000000e+00 : f32
    %25 = vector.broadcast %cst_7 : f32 to vector<16x256xf32>
    %26 = arith.maximumf %24, %25 : vector<16x256xf32>
    %27 = vector.extract_strided_slice %23 {offsets = [16, 0], sizes = [8, 256], strides = [1, 1]} : vector<24x256xf32> to vector<8x256xf32>
    %c0_8 = arith.constant 0 : index
    %c0_9 = arith.constant 0 : index
    %28 = vector.load %arg4[%c0_8, %c0_9] : memref<8x48xf32, #tpu.memory_space<vmem>>, vector<8x48xf32>
    %c130_i32_10 = arith.constant 130 : i32
    %29 = tpu.dynamic_rotate %26 by %c130_i32_10 dim 1 : vector<16x256xf32>, i32 -> vector<16x256xf32>
    %c2_i32_11 = arith.constant 2 : i32
    %30 = tpu.dynamic_rotate %26 by %c2_i32_11 dim 1 : vector<16x256xf32>, i32 -> vector<16x256xf32>
    %31 = vector.shape_cast %5 : vector<1x256xi1> to vector<1x256xi1>
    %32 = vector.broadcast %31 : vector<1x256xi1> to vector<16x256xi1>
    %33 = arith.select %32, %29, %30 : vector<16x256xi1>, vector<16x256xf32>
    %c254_i32_12 = arith.constant 254 : i32
    %34 = tpu.dynamic_rotate %26 by %c254_i32_12 dim 1 : vector<16x256xf32>, i32 -> vector<16x256xf32>
    %c126_i32_13 = arith.constant 126 : i32
    %35 = tpu.dynamic_rotate %26 by %c126_i32_13 dim 1 : vector<16x256xf32>, i32 -> vector<16x256xf32>
    %36 = vector.shape_cast %7 : vector<1x256xi1> to vector<1x256xi1>
    %37 = vector.broadcast %36 : vector<1x256xi1> to vector<16x256xi1>
    %38 = arith.select %37, %34, %35 : vector<16x256xi1>, vector<16x256xf32>
    %39 = tpu.concatenate %33, %26, %38 in 0 : vector<16x256xf32>, vector<16x256xf32>, vector<16x256xf32> -> vector<48x256xf32>
    %cst_14 = arith.constant dense<0.000000e+00> : vector<8x256xf32>
    %40 = tpu.matmul %28, %39, %cst_14 {dimension_numbers = #tpu.dot_dimension_numbers<[1], [0], [0], [1], [0, 0, 1, 1], [], []>} : vector<8x48xf32>, vector<48x256xf32>, vector<8x256xf32> -> vector<8x256xf32>
    %c0_15 = arith.constant 0 : index
    %c0_16 = arith.constant 0 : index
    %41 = vector.load %arg5[%c0_15, %c0_16] : memref<8x1xf32, #tpu.memory_space<vmem>>, vector<8x1xf32>
    %42 = vector.broadcast %41 : vector<8x1xf32> to vector<8x256xf32>
    %43 = arith.addf %40, %42 : vector<8x256xf32>
    %cst_17 = arith.constant 0.000000e+00 : f32
    %44 = vector.broadcast %cst_17 : f32 to vector<8x256xf32>
    %45 = arith.maximumf %43, %44 : vector<8x256xf32>
    %46 = arith.addf %45, %27 : vector<8x256xf32>
    %c0_18 = arith.constant 0 : index
    %c0_19 = arith.constant 0 : index
    %47 = vector.load %arg6[%c0_18, %c0_19] : memref<8x256xf32, #tpu.memory_space<vmem>>, vector<8x256xf32>
    tpu.vector_store %arg6[%c0_18, %c0_19], %46 {strides = array<i32>} : memref<8x256xf32, #tpu.memory_space<vmem>>, vector<8x256xf32>,
    return
  }
  func.func @transform_0(%arg0: i32) -> (i32, i32) {
    %c0_i32 = arith.constant 0 : i32
    %c0_i32_0 = arith.constant 0 : i32
    return %c0_i32, %arg0 : i32, i32
  }
  func.func @transform_1(%arg0: i32) -> (i32, i32) {
    %c0_i32 = arith.constant 0 : i32
    %c0_i32_0 = arith.constant 0 : i32
    %c0_i32_1 = arith.constant 0 : i32
    return %c0_i32, %c0_i32_0 : i32, i32
  }
  func.func @transform_2(%arg0: i32) -> (i32, i32) {
    %c0_i32 = arith.constant 0 : i32
    %c0_i32_0 = arith.constant 0 : i32
    %c0_i32_1 = arith.constant 0 : i32
    return %c0_i32, %c0_i32_0 : i32, i32
  }
  func.func @transform_3(%arg0: i32) -> (i32, i32) {
    %c0_i32 = arith.constant 0 : i32
    %c0_i32_0 = arith.constant 0 : i32
    %c0_i32_1 = arith.constant 0 : i32
    return %c0_i32, %c0_i32_0 : i32, i32
  }
  func.func @transform_4(%arg0: i32) -> (i32, i32) {
    %c0_i32 = arith.constant 0 : i32
    %c0_i32_0 = arith.constant 0 : i32
    %c0_i32_1 = arith.constant 0 : i32
    return %c0_i32, %c0_i32_0 : i32, i32
  }
  func.func @transform_5(%arg0: i32) -> (i32, i32) {
    %c0_i32 = arith.constant 0 : i32
    %c0_i32_0 = arith.constant 0 : i32
    return %c0_i32, %arg0 : i32, i32
  }
}

</mosaic_0001>

<bundles_post_ra>
// kernel: tpu_custom_call.1
= control target key start
LH: loop header
LB: loop body
LE: loop exit
PB: predicated region body
PF: predicated region fallthrough
CT: control target
= control target key end

     0   :  { %10 = vsyncpa [#allocation3], 0  ;;  %s1071_s0 = inlined_call_operand.vmem [shape: f32[8,512], index: 0, kind: input, shape index: {}]   ;;  %s1072_s1 = inlined_call_operand.hbm [shape: f32[24,24], index: 1, kind: input, shape index: {}]   ;;  %s1073_s2 = inlined_call_operand.vmem [shape: f32[24,1], index: 2, kind: input, shape index: {}]   ;;  %s1074_s3 = inlined_call_operand.vmem [shape: f32[8,48], index: 3, kind: input, shape index: {}]   ;;  %s1075_s4 = inlined_call_operand.vmem [shape: f32[8,1], index: 4, kind: input, shape index: {}]   ;;  %s1076_s5 = inlined_call_operand.hbm [shape: f32[8,512], index: 5, kind: output, shape index: {}]  }
   0x1   :  { %11 = vsyncpa [#allocation4], 0 }
   0x2   :  { %13 = vsyncpa [#allocation4 + $0x1], 0  ;;  %s854_s18 = smov 0   ;;  %s856_s19 = smov 0  }
   0x3   :  { %s858_s20 = smov 0   ;;  %s860_s21 = smov 0  }
   0x4 LB: > { %s875_s22 = sadd.s32 4294967295, %s814_s21   ;;  %s602_s23 = sadd.s32 4294967294, %s814_s21   ;;  %s814_s21 = sphi %s860_s21, %s1096_s21   ;;  %s810_s20 = sphi %s858_s20, %s1095_s20   ;;  %s806_s19 = sphi %s856_s19, %s1094_s19   ;;  %s802_s18 = sphi %s854_s18, %s1093_s18  }
   0x5   : > { %s879_s24 = sadd.s32 1, %s814_s21   ;;  %s136_s25 = sadd.s32 1, %s810_s20 }
   0x6   : > { %s133_s26 = ssub.s32 %s814_s21, %s879_s24  ;;  %p146_p0 = scmp.ne.s32.totalorder %s810_s20, %s806_s19 }
   0x7   : > { %p134_p1 = scmp.eq.s32.totalorder %s133_s26, 0  ;;  %p147_p2 = scmp.eq.s32.totalorder %s875_s22, 1 }
   0x8   : > { %p152_p3 = scmp.ne.s32.totalorder %s806_s19, %s802_s18  ;;  %p153_p4 = scmp.eq.s32.totalorder %s602_s23, 1 }
   0x9   : > { %s890_s27 = scalar_select %p134_p1, %s810_s20, %s136_s25  }
   0xa   : > { %p892_p5 = por %p147_p2, %p146_p0  ;;  %p896_p6 = por %p153_p4, %p152_p3 }
   0xb   : > { %p603_p7 = scmp.ge.s32.totalorder %s814_s21, 1  ;;  %p160_p8 = scmp.lt.s32.totalorder %s814_s21, 3 }
   0xc   : > { %s1080_s28 = scalar_select %p892_p5, 1, 0 }
   0xd   : > { %s1081_s29 = scalar_select %p896_p6, 1, 0 }
   0xe   : > { %p1077_p9 = scmp.eq.s32.totalorder %s875_s22, 0  ;;  %p903_p10 = pnand %p603_p7, %p160_p8 }
   0xf   : > { %s816_s6 = smov [#allocation2]   ;;  %s720_s11 = scalar_lea.hbm %s1072_s1, 384 }
  0x10   : > { %s1082_s30 = scalar_select %p903_p10, 1, 0 }
  0x11   : > { %s172_s7 = sshll.u32 %s816_s6, 4  ;;  %p643_p11 = pneg %p903_p10  ;;  %s173_s7 = int_to_ptr.vmem [resolvable:$true] %s172_s7 }
  0x12   : > { %p721_p13 = scmp.ne.s32.totalorder %s1072_s1, %s720_s11  ;;  %p727_p3 = scmp.lt.u32.totalorder %s720_s11, %s1072_s1 }
  0x13   : > { %p911_p12 = pnand %p1077_p9, %p643_p11 }
  0x15   : > { %p722_p0 = pneg %p911_p12 }
  0x17   : > { %p723_p1 = pnand %p722_p0, %p721_p13 }
  0x19   : > { %p724_p2 = pneg %p723_p1 }
  0x1b   : > { %p729_p4 = pnand %p727_p3, %p724_p2 }
  0x1d   : > { %732 = shalt.err (!%p729_p4)
}
  0x1e   : > { %s733_s16 = scalar_lea.vmem %s173_s7, 384  ;;  %p741_p9 = scmp.lt.s32.totalorder %s173_s7, %s173_s7 }
  0x1f   : > { %p734_p7 = scmp.ne.s32.totalorder %s173_s7, %s733_s16  ;;  %p742_p6 = scmp.lt.s32.totalorder %s733_s16, %s733_s16 }
  0x21   : > { %p736_p8 = pnand %p734_p7, %p722_p0  ;;  %p743_p5 = por %p742_p6, %p741_p9 }
  0x23   : > { %p737_p11 = pneg %p736_p8 }
  0x25   : > { %p744_p10 = pnand %p743_p5, %p737_p11 }
  0x27   : > { %747 = shalt.err (!%p744_p10)
}
  0x28   : > { %s817_s17 = smov 128   ;;  %s818_s23 = smov 8  }
  0x29   : > { %646 = dma.hbm_to_vmem [thread:$0]  (!%p911_p12), %s1072_s1, 384, %s173_s7, [#allocation3], %s817_s17, %s817_s17, %s818_s23  }
  0x2a   : > { %p1084_p13 = scmp.ne.s32.totalorder %s1082_s30, 0 }
  0x2b   : > { %p1085_p1 = scmp.eq.s32.totalorder (!%p1084_p13), %s875_s22, 0 }
  0x2c   : > { %206 = sbr.rel (%p1084_p13) target bundleno = 780 (0x30c), region = 40 }
  0x33   : > { %793 = dma.done.wait (%p1085_p1), [#allocation3], 384   ;;  %p1086_p0 = pmov %p1085_p1 }
  0x34   : > { %s609_s6 = sshll.u32 %s875_s22, 1  ;;  %s819_s30 = smov 126   ;;  %v820_v3 = vmov 0.0   ;;  %v281_v4 = vld [vmem:[%s1073_s2] sm:$0xff]  ;;  %v822_v5 = vmov 0   ;;  %v282_v6 = vld [vmem:[%s1073_s2 + $0x8] sm:$0xff]  ;;  %v243_v7 = vlaneseq }
  0x35   : > { %795 = vsyncadd (%p1086_p0), [#allocation3], 4294966912  ;;  %p235_p5 = scmp.lt.s32.totalorder %s609_s6, 3  ;;  %373 = vmatprep.mubr.f32.mxu0 %v820_v3  ;;  %503 = vmatprep.mubr.f32.mxu1 %v820_v3  ;;  %s821_s7 = smov 2   ;;  %v252_v28 = vld [vmem:[#allocation2] sm:$0xff]  ;;  %vm299_vm4 = vcmask 195584  }
  0x36   : > { %698 = vset.pattern.permute.xlu1 %v822_v5  ;;  %699 = vset.pattern.permute.xlu0 %v822_v5  ;;  %v950_v8 = vand.u32 127, %v243_v7  ;;  %v253_v29 = vld [vmem:[#allocation2 + $0x8] sm:$0xff]  ;;  %v254_v30 = vld [vmem:[#allocation2 + $0x10] sm:$0xff]  ;;  %v429_v49 = vld [vmem:[%s1075_s4] sm:$0xff]  ;;  %vm435_vm5 = vcmask 392192   ;;  %s620_s8 = sshll.u32 %s875_s22, 8 }
  0x37   : > { %s1098_s6 = smov (!%p235_p5, %s609_s6), 3  ;;  %v283_v50 = vld [vmem:[%s1073_s2 + $0x10] sm:$0xff]  ;;  %s1029_s13 = scalar_lea.hbm %s1076_s5, %s620_s8 }
  0x38   : > { %s610_s9 = sshll.u32 %s1098_s6, 3  ;;  %v245_v9 = vadd.s32 128, %v950_v8  ;;  %vm248_vm0 = vcmp.lt.s32.totalorder %v950_v8, 2  ;;  %vm250_vm2 = vcmp.lt.s32.totalorder %v950_v8, 126  ;;  %p1091_p9 = scmp.ne.s32.totalorder %s1080_s28, 0 }
  0x39   : > { %s238_s11 = scalar_lea.vmem %s1071_s0, %s610_s9  ;;  %s231_s9 = sand.u32 1, %s806_s19  }
  0x3a   : > { %v241_v0 = vld [vmem:[%s238_s11] sm:$0xff]  ;;  %v242_v1 = vld [vmem:[%s238_s11 + $0x8] sm:$0xff]  ;;  %v247_v10 = vand.u32 127, %v245_v9  ;;  %s608_s10 = sshll.u32 %s231_s9, 4  ;;  %s517_s14 = scalar_lea.sflag [#allocation4], %s231_s9 }
  0x3b   : > { %v693_v2 = vpack.i.bf16 %v242_v1, %v241_v0  ;;  %270 = vrot.lane.b32.xlu1 %v242_v1, %s819_s30  ;;  %s233_s11 = scalar_lea.vmem [#allocation5], %s608_s10  ;;  %s823_s15 = smov [#allocation5]  }
  0x3c   : > { %vm954_vm1 = vcmp.lt.s32.totalorder %v247_v10, 2  ;;  %vm963_vm3 = vcmp.lt.s32.totalorder %v247_v10, 126  ;;  %s752_s16 = sshll.u32 %s823_s15, 4  ;;  %s753_s16 = int_to_ptr.vmem [resolvable:$false] %s752_s16 }
  0x3d   : > { %694 = vrot.lane.b32.xlu0 %v693_v2, %s821_s7  ;;  %s754_s17 = scalar_lea.vmem %s753_s16, 512 }
  0x3f   : > { %286 = vperm.xlu1 %698, %v281_v4  }
  0x41   : > { %268 = vrot.lane.b32.xlu0 %v241_v0, %s819_s30 }
  0x45   : > { %291 = vperm.xlu0 %699, %v282_v6  }
  0xad   : > { %v271_v15 = vpop.permute.xlu1 %270 }
  0xaf   : > { %v695_v11 = vpop.permute.xlu0 %694 }
  0xb0   : > { %v697_v12 = vunpack.i.h.bf16 %v695_v11  ;;  %v696_v13 = vunpack.i.l.bf16 %v695_v11 }
  0xb2   : > { %v260_v16 = vsel %vm248_vm0, %v696_v13, %v697_v12  ;;  %v261_v17 = vsel %vm248_vm0, %v697_v12, %v696_v13 }
  0xb3   : > { %v267_v19 = vsel %vm954_vm1, %v261_v17, %v260_v16  ;;  %v269_v20 = vpop.permute.xlu0 %268  ;;  %v266_v21 = vsel %vm248_vm0, %v260_v16, %v261_v17 }
  0xb4   : > { %v621_v22 = vpack.c.bf16 %v242_v1, %v267_v19  ;;  %v273_v23 = vsel %vm250_vm2, %v269_v20, %v271_v15  ;;  %v274_v24 = vsel %vm250_vm2, %v271_v15, %v269_v20  ;;  %v623_v25 = vpack.c.bf16 %v241_v0, %v266_v21 }
  0xb5   : > { %v280_v26 = vsel %vm963_vm3, %v274_v24, %v273_v23  ;;  %v279_v27 = vsel %vm250_vm2, %v273_v23, %v274_v24  ;;  %v396_v23 = vld [vmem:[%s1074_s3] sm:$0xff] }
  0xb6   : > { %622 = vmatprep.subr.bf16.mxu0 %v621_v22 }
  0xb7   : > { %624 = vmatpush1.bf16.msra.mxu0 %v623_v25 }
  0xb8   : > { %313 = vmatprep.subr.mxu0 %v280_v26 }
  0xbb   : > { %314 = vmatpush1.msra.mxu0 %v279_v27 }
  0xbc   : > { %611 = vmatmul.mubr.msk.f32.vlgmr.msra.gmra.mrb[0].mxu0 %vm299_vm4, %v252_v28 }
  0xbd   : > { %379 = vmatprep.mubr.f32.mxu0 %v820_v3 }
  0xbe   : > { %v287_v31 = vpop.permute.xlu1 %286 }
  0xc0   : > { %612 = vmatmul.mubr.msk.f32.gmra.mrb[2].mxu0 %vm299_vm4, %v253_v29 }
  0xc1   : > { %385 = vmatprep.mubr.f32.mxu0 %v820_v3 }
  0xc4   : > { %613 = vmatmul.mubr.msk.f32.gmra.mrb[4].mxu0 %vm299_vm4, %v254_v30  ;;  %v292_v34 = vpop.permute.xlu0 %291 }
 0x18f   : > { %v375_v32 = vpop.f32.mrb[0].mxu0 }
 0x190   : > { %v377_v33 = vpop.f32.mrb[1].mxu0  ;;  %v376_v35 = vadd.f32 %v375_v32, %v287_v31 }
 0x191   : > { %v378_v36 = vadd.f32 %v377_v33, %v287_v31 }
 0x192   : > { %v392_v41 = vmax.f32 %v376_v35, 0.0 }
 0x193   : > { %v381_v37 = vpop.f32.mrb[2].mxu0  ;;  %v393_v43 = vmax.f32 %v378_v36, 0.0 }
 0x194   : > { %v382_v38 = vadd.f32 %v381_v37, %v292_v34  ;;  %v383_v39 = vpop.f32.mrb[3].mxu0 }
 0x195   : > { %v384_v40 = vadd.f32 %v383_v39, %v292_v34 }
 0x196   : > { %v394_v42 = vmax.f32 %v382_v38, 0.0 }
 0x197   : > { %v395_v44 = vmax.f32 %v384_v40, 0.0  ;;  %v387_v51 = vpop.f32.mrb[4].mxu0 }
 0x198   : > { %v710_v45 = vpack.i.bf16 %v394_v42, %v392_v41  ;;  %v631_v46 = vpack.c.bf16 %v394_v42, %v392_v41  ;;  %v389_v52 = vpop.f32.mrb[5].mxu0 }
 0x199   : > { %v705_v47 = vpack.i.bf16 %v395_v44, %v393_v43  ;;  %v629_v48 = vpack.c.bf16 %v395_v44, %v393_v43 }
 0x19a   : > { %711 = vrot.lane.b32.xlu0 %v710_v45, %s819_s30  ;;  %701 = vrot.lane.b32.xlu1 %v710_v45, %s821_s7 }
 0x19e   : > { %432 = vperm.xlu0 %699, %v429_v49   ;;  %706 = vrot.lane.b32.xlu1 %v705_v47, %s821_s7 }
 0x1a2   : > { %716 = vrot.lane.b32.xlu1 %v705_v47, %s819_s30  ;;  %s531_s30 = sshll.u32 %s233_s11, 4  ;;  %s1031_s30 = int_to_ptr.vmem [resolvable:$true] %s531_s30 }
 0x1a3   : > { %s748_s22 = scalar_lea.vmem %s1031_s30, 256  ;;  %p755_p2 = scmp.lt.s32.totalorder %s1031_s30, %s753_s16 }
 0x1a4   : > { %p749_p6 = scmp.ne.s32.totalorder %s1031_s30, %s748_s22  ;;  %p756_p3 = scmp.lt.s32.totalorder %s754_s17, %s748_s22 }
 0x1a6   : > { %296 = vperm.xlu1 %698, %v283_v50   ;;  %p750_p10 = pnand %p749_p6, %p1091_p9  ;;  %p757_p4 = por %p756_p3, %p755_p2 }
 0x1a8   : > { %p751_p12 = pneg %p750_p10 }
 0x1aa   : > { %p758_p7 = pnand %p757_p4, %p751_p12 }
 0x20c   : > { %v702_v53 = vpop.permute.xlu1 %701  ;;  %v712_v54 = vpop.permute.xlu0 %711 }
 0x20d   : > { %v704_v56 = vunpack.i.h.bf16 %v702_v53  ;;  %v703_v57 = vunpack.i.l.bf16 %v702_v53  ;;  %v714_v60 = vunpack.i.h.bf16 %v712_v54  ;;  %v713_v61 = vunpack.i.l.bf16 %v712_v54 }
 0x210   : > { %v707_v55 = vpop.permute.xlu1 %706 }
 0x211   : > { %v709_v58 = vunpack.i.h.bf16 %v707_v55  ;;  %v708_v59 = vunpack.i.l.bf16 %v707_v55 }
 0x213   : > { %v405_v62 = vsel %vm248_vm0, %v703_v57, %v708_v59  ;;  %v406_v63 = vsel %vm248_vm0, %v704_v56, %v709_v58  ;;  %v407_v0 = vsel %vm248_vm0, %v708_v59, %v703_v57  ;;  %v408_v1 = vsel %vm248_vm0, %v709_v58, %v704_v56 }
 0x214   : > { %v717_v2 = vpop.permute.xlu1 %716  ;;  %v410_v3 = vsel %vm954_vm1, %v407_v0, %v405_v62  ;;  %v412_v4 = vsel %vm954_vm1, %v408_v1, %v406_v63  ;;  %v409_v5 = vsel %vm248_vm0, %v405_v62, %v407_v0  ;;  %v411_v6 = vsel %vm248_vm0, %v406_v63, %v408_v1 }
 0x215   : > { %v719_v7 = vunpack.i.h.bf16 %v717_v2  ;;  %v718_v9 = vunpack.i.l.bf16 %v717_v2  ;;  %v625_v10 = vpack.c.bf16 %v412_v4, %v410_v3  ;;  %v627_v11 = vpack.c.bf16 %v411_v6, %v409_v5 }
 0x217   : > { %v422_v12 = vsel %vm250_vm2, %v714_v60, %v719_v7  ;;  %v424_v13 = vsel %vm250_vm2, %v719_v7, %v714_v60  ;;  %v421_v14 = vsel %vm250_vm2, %v713_v61, %v718_v9  ;;  %v423_v15 = vsel %vm250_vm2, %v718_v9, %v713_v61  ;;  %626 = vmatprep.subr.bf16.mxu1 %v625_v10 }
 0x218   : > { %628 = vmatpush1.bf16.msra.mxu1 %v627_v11  ;;  %v426_v16 = vsel %vm963_vm3, %v423_v15, %v421_v14  ;;  %v428_v17 = vsel %vm963_vm3, %v424_v13, %v422_v12  ;;  %v425_v20 = vsel %vm250_vm2, %v421_v14, %v423_v15  ;;  %v427_v21 = vsel %vm250_vm2, %v422_v12, %v424_v13 }
 0x219   : > { %630 = vmatprep.subr.bf16.mxu1 %v629_v48  ;;  %v633_v19 = vpack.c.bf16 %v428_v17, %v426_v16  ;;  %v635_v22 = vpack.c.bf16 %v427_v21, %v425_v20 }
 0x21c   : > { %632 = vmatpush1.bf16.msra.mxu1 %v631_v46 }
 0x21d   : > { %634 = vmatprep.subr.bf16.mxu1 %v633_v19  ;;  %v433_v18 = vpop.permute.xlu0 %432 }
 0x220   : > { %636 = vmatpush1.bf16.msra.mxu1 %v635_v22 }
 0x223   : > { %614 = vmatmul.mubr.msk.f32.vlgmr.msra.gmra.mrb[0].mxu1 %vm435_vm5, %v396_v23 }
 0x225   : > { %v297_v24 = vpop.permute.xlu1 %296 }
 0x226   : > { %v388_v28 = vadd.f32 %v387_v51, %v297_v24  ;;  %v390_v30 = vadd.f32 %v389_v52, %v297_v24 }
 0x2f6   : > { %v505_v25 = vpop.f32.mrb[0].mxu1 }
 0x2f7   : > { %v506_v26 = vadd.f32 %v505_v25, %v433_v18  ;;  %v507_v27 = vpop.f32.mrb[1].mxu1 }
 0x2f8   : > { %v508_v8 = vadd.f32 %v507_v27, %v433_v18 }
 0x2f9   : > { %v510_v29 = vmax.f32 %v506_v26, 0.0 }
 0x2fa   : > { %v511_v31 = vmax.f32 %v508_v8, 0.0 }
 0x2fb   : > { %v512_v32 = vadd.f32 %v510_v29, %v388_v28 }
 0x2fc   : > { %v513_v33 = vadd.f32 %v511_v31, %v390_v30 }
 0x2fd   : > { %514 = vst [vmem:[%s233_s11] sm:$0xff] %v512_v32 }
 0x2fe   : > { %515 = vst [vmem:[%s233_s11 + $0x8] sm:$0xff] %v513_v33 }
 0x2ff   : > { %761 = shalt.err (!%p758_p7)
}
 0x300   : > { %s762_s23 = scalar_lea.hbm %s1029_s13, 256  ;;  %s766_s6 = scalar_lea.hbm %s1076_s5, 512 }
 0x301   : > { %p763_p8 = scmp.ne.s32.totalorder %s1029_s13, %s762_s23  ;;  %p767_p1 = scmp.lt.u32.totalorder %s1029_s13, %s1076_s5 }
 0x302   : > { %p768_p0 = scmp.lt.u32.totalorder %s766_s6, %s762_s23  ;;  %p770_p6 = scmp.lt.u32.totalorder %s762_s23, %s1029_s13 }
 0x303   : > { %p764_p11 = pnand %p763_p8, %p1091_p9 }
 0x304   : > { %p769_p5 = por %p768_p0, %p767_p1 }
 0x305   : > { %p765_p13 = pneg %p764_p11 }
 0x306   : > { %p771_p10 = por %p770_p6, %p769_p5 }
 0x308   : > { %p772_p12 = pnand %p771_p10, %p765_p13 }
 0x30a   : > { %775 = shalt.err (!%p772_p12)
}
 0x30b   : > { %641 = dma.vmem_to_hbm [thread:$0]  (%p1091_p9), %s1031_s30, 256, %s1029_s13, %s517_s14  }
 0x30c PF: > { %p653_p2 = scmp.ge.s32.totalorder %s814_s21, 2  ;;  %s543_s8 = sand.u32 1, %s802_s18  }
 0x30d   : > { %p1092_p3 = scmp.ne.s32.totalorder %s1081_s29, 0  ;;  %s544_s11 = scalar_lea.sflag [#allocation4], %s543_s8 }
 0x30f   : > { %p648_p4 = pnand %p653_p2, %p1092_p3 }
 0x311   : > { %797 = dma.done.wait (!%p648_p4), %s544_s11, 256  }
 0x312   : > { %799 = vsyncadd (!%p648_p4), %s544_s11, 4294967040  ;;  %p16_p7 = scmp.ge.s32.totalorder %s879_s24, 4   ;;  %s1093_s18 = smov %s806_s19 }
 0x313   : > { %s1094_s19 = smov %s810_s20  ;;  %s1095_s20 = smov %s890_s27 }
 0x314   : > { %s1096_s21 = smov %s879_s24  ;;  %18 = sbr.rel (!%p16_p7) target bundleno = 4 (0x4), region = 80 }
 0x31b   :  { %549 = vsyncpa [#allocation3], 1 }
 0x31c   :  { %551 = vsyncpa [#allocation3 + $0x1], 1 }
 0x31d   :  { %552 = vsyncpa [#allocation4], 1 }
 0x31e   :  { %554 = vsyncpa [#allocation4 + $0x1], 1 }

</bundles_post_ra>
